<compile_context>
chip_gen: v7x
topology: tpu7x:2x2x1
jax: 0.10.0
libtpu: 0.0.40
codegen_flags: <defaults>
</compile_context>

<pallas_src>
import functools

import jax
import jax.numpy as jnp
from jax.experimental import pallas as pl
from jax.experimental.pallas import tpu as pltpu

EPS = 1e-5
F32 = jnp.float32
BF16 = jnp.bfloat16

# --- tiling / behavior knobs ------------------------------------------------
MEM_TILE_TARGET_BYTES = 1 << 20     # ~1 MiB streamed blocks in mem-bound kernels
MEM_TILE_MAX_LANES = 1 << 14
FUSE_TILE_MAX_LANES = 1024          # keep fusion working set under v7x VMEM
STAT_CHUNKS = 2                     # split stats S-axis -> 2nd parallel grid axis (v7x)
APPROX_RECIP = True                 # exactness toggle for softmax normalization


def pick_tile(S, cap):
    """Largest multiple-of-128 divisor of S that is <= cap (with fallbacks)."""
    # TODO(synk): pad S to a multiple of 128 with a masked tail tile instead of
    # falling back to small / whole-array tiles for pathological S.
    cap = int(max(1, min(cap, S)))
    if S <= cap:
        return S
    best = 0
    t = 128
    while t <= cap:
        if S % t == 0:
            best = t
        t += 128
    if best:
        return best
    for t in range(cap, 0, -1):
        if S % t == 0:
            return t
    return S


def mem_tile(S, C, itemsize=2):
    cap = max(512, MEM_TILE_TARGET_BYTES // max(1, C * itemsize))
    return pick_tile(S, min(cap, MEM_TILE_MAX_LANES))


def fuse_tile(S, C):
    del C
    return pick_tile(S, FUSE_TILE_MAX_LANES)


# ---------------------------------------------------------------------------
# InstanceNorm3d: tiled stats (merged sum/sumsq) + tiled apply (+res, +ReLU)
# ---------------------------------------------------------------------------
def _in_stats_kernel(x_ref, stat_ref):
    @pl.when(pl.program_id(2) == 0)
    def _():
        stat_ref[...] = jnp.zeros_like(stat_ref)

    # TODO(synk): fold tokens into sublanes when C < 8 to fill vregs fully.
    x = x_ref[0].astype(F32)                              # [C, ts]
    s = jnp.sum(x, axis=1, keepdims=True)                 # [C, 1]
    q = jnp.sum(x * x, axis=1, keepdims=True)             # [C, 1]
    stat_ref[0, 0] += jnp.concatenate([s, q], axis=1)     # [C, 2]


def in_stats_pallas(xf, ts):
    """Per-(batch, channel) sum / sum-of-squares over tokens -> (B, C, 2) f32."""
    B, C, S = xf.shape
    n_s = S // ts
    nc = STAT_CHUNKS if (STAT_CHUNKS > 1 and n_s % STAT_CHUNKS == 0) else 1
    n_sc = n_s // nc
    raw = pl.pallas_call(
        _in_stats_kernel,
        out_shape=jax.ShapeDtypeStruct((B, nc, C, 2), F32),
        grid=(B, nc, n_sc),
        in_specs=[pl.BlockSpec((1, C, ts),
                               lambda b, c, s: (b, 0, c * n_sc + s))],
        out_specs=pl.BlockSpec((1, 1, C, 2), lambda b, c, s: (b, c, 0, 0)),
        compiler_params=pltpu.CompilerParams(
            dimension_semantics=("parallel", "parallel", "arbitrary")),
    )(xf)
    return raw.sum(axis=1) if nc > 1 else raw[:, 0]


def in_norm_coeffs(stats, S):
    """stats (B, C, 2) -> per-channel affine (scale, bias) each (B, C, 1) f32."""
    mean = stats[..., 0] / S
    var = jnp.maximum(stats[..., 1] / S - mean * mean, 0.0)
    rstd = jax.lax.rsqrt(var + EPS)
    return rstd[..., None], (-mean * rstd)[..., None]


def _in_apply_kernel(*refs, relu, has_res, res_affine):
    x_ref, sc_ref, bi_ref = refs[0], refs[1], refs[2]
    i = 3
    r_ref = rsc_ref = rbi_ref = None
    if has_res:
        r_ref = refs[i]
        i += 1
        if res_affine:
            rsc_ref, rbi_ref = refs[i], refs[i + 1]
            i += 2
    o_ref = refs[i]

    y = x_ref[0].astype(F32) * sc_ref[0] + bi_ref[0]       # [C, ts]
    if has_res:
        r = r_ref[0].astype(F32)
        if res_affine:
            r = r * rsc_ref[0] + rbi_ref[0]
        y = y + r
    if relu:
        y = jnp.maximum(y, 0.0)
    o_ref[0] = y.astype(o_ref.dtype)


def in_apply_pallas(xf, scale, bias, ts, relu=False, residual=None,
                    r_scale=None, r_bias=None, alias=True):
    B, C, S = xf.shape
    n_s = S // ts
    has_res = residual is not None
    res_affine = r_scale is not None
    tile = pl.BlockSpec((1, C, ts), lambda b, s: (b, 0, s))
    stat = pl.BlockSpec((1, C, 1), lambda b, s: (b, 0, 0))
    in_specs = [tile, stat, stat]
    args = [xf, scale, bias]
    if has_res:
        in_specs.append(tile)
        args.append(residual)
        if res_affine:
            in_specs += [stat, stat]
            args += [r_scale, r_bias]
    io_alias = {0: 0} if (alias and xf.dtype == BF16) else {}
    return pl.pallas_call(
        functools.partial(_in_apply_kernel, relu=relu, has_res=has_res,
                          res_affine=res_affine),
        out_shape=jax.ShapeDtypeStruct((B, C, S), BF16),
        grid=(B, n_s),
        in_specs=in_specs,
        out_specs=tile,
        input_output_aliases=io_alias,
        compiler_params=pltpu.CompilerParams(
            dimension_semantics=("parallel", "parallel")),
    )(*args)


# ---------------------------------------------------------------------------
# 1x1x1 conv (channel mix) fused with its InstanceNorm stats pass
# ---------------------------------------------------------------------------
def _conv1x1_stats_kernel(x_ref, w_ref, y_ref, stat_ref):
    @pl.when(pl.program_id(2) == 0)
    def _():
        stat_ref[...] = jnp.zeros_like(stat_ref)

    y = jnp.dot(w_ref[...], x_ref[0], preferred_element_type=F32)   # [Cout, ts]
    y_ref[0] = y.astype(y_ref.dtype)
    s = jnp.sum(y, axis=1, keepdims=True)
    q = jnp.sum(y * y, axis=1, keepdims=True)
    stat_ref[0, 0] += jnp.concatenate([s, q], axis=1)


def conv1x1_stats_pallas(xf, w2, ts):
    B, Cin, S = xf.shape
    Cout = w2.shape[0]
    n_s = S // ts
    nc = STAT_CHUNKS if (STAT_CHUNKS > 1 and n_s % STAT_CHUNKS == 0) else 1
    n_sc = n_s // nc
    y, raw = pl.pallas_call(
        _conv1x1_stats_kernel,
        out_shape=(jax.ShapeDtypeStruct((B, Cout, S), BF16),
                   jax.ShapeDtypeStruct((B, nc, Cout, 2), F32)),
        grid=(B, nc, n_sc),
        in_specs=[pl.BlockSpec((1, Cin, ts),
                               lambda b, c, s: (b, 0, c * n_sc + s)),
                  pl.BlockSpec((Cout, Cin), lambda b, c, s: (0, 0))],
        out_specs=(pl.BlockSpec((1, Cout, ts),
                                lambda b, c, s: (b, 0, c * n_sc + s)),
                   pl.BlockSpec((1, 1, Cout, 2), lambda b, c, s: (b, c, 0, 0))),
        compiler_params=pltpu.CompilerParams(
            dimension_semantics=("parallel", "parallel", "arbitrary")),
    )(xf, w2)
    stats = raw.sum(axis=1) if nc > 1 else raw[:, 0]
    return y, stats


# ---------------------------------------------------------------------------
# Hermes prior <-> feature fusion (two S-tiled kernels per block)
# ---------------------------------------------------------------------------
def _ln_rows(x):      # layernorm over last axis (per prior token)
    m = jnp.mean(x, axis=-1, keepdims=True)
    xc = x - m
    v = jnp.mean(xc * xc, axis=-1, keepdims=True)
    return xc * jax.lax.rsqrt(v + EPS)


def _ln_cols(x):      # layernorm over axis 0 (per feature token, [C, ts] layout)
    m = jnp.mean(x, axis=0, keepdims=True)
    xc = x - m
    v = jnp.mean(xc * xc, axis=0, keepdims=True)
    return xc * jax.lax.rsqrt(v + EPS)


def _prior_update_kernel(f_ref, p_ref, wq1, wk1t, wv1t, wo1, wm1, wm2,
                         po_ref, q_sc, m_sc, l_sc, acc_sc, *, scale):
    """Priors attend to features (online softmax over S tiles) + prior MLP."""
    sidx = pl.program_id(1)

    @pl.when(sidx == 0)
    def _():
        p0 = p_ref[0]                                     # [P, C] f32
        q_sc[...] = jnp.dot(_ln_rows(p0).astype(BF16), wq1[...],
                            preferred_element_type=F32).astype(BF16)
        m_sc[...] = jnp.full_like(m_sc, -jnp.inf)
        l_sc[...] = jnp.zeros_like(l_sc)
        acc_sc[...] = jnp.zeros_like(acc_sc)

    x = f_ref[0].astype(F32)                              # [C, ts]
    xl = _ln_cols(x).astype(BF16)
    k_t = jnp.dot(wk1t[...], xl, preferred_element_type=F32)     # [C, ts]
    v_t = jnp.dot(wv1t[...], xl, preferred_element_type=F32)     # [C, ts]
    sc = jnp.dot(q_sc[...], k_t.astype(BF16),
                 preferred_element_type=F32) * scale             # [P, ts]

    m_prev = m_sc[...]
    m_new = jnp.maximum(m_prev, jnp.max(sc, axis=1, keepdims=True))
    alpha = jnp.exp(m_prev - m_new)
    e = jnp.exp(sc - m_new)
    l_sc[...] = alpha * l_sc[...] + jnp.sum(e, axis=1, keepdims=True)
    acc_sc[...] = alpha * acc_sc[...] + jax.lax.dot_general(
        e.astype(BF16), v_t.astype(BF16), (((1,), (1,)), ((), ())),
        preferred_element_type=F32)                       # [P, C]
    m_sc[...] = m_new

    # finalize (prior MLP + output write) only on the last S tile
    @pl.when(sidx == pl.num_programs(1) - 1)
    def _():
        p0 = p_ref[0]
        attn = acc_sc[...] * pl.reciprocal(l_sc[...], approx=APPROX_RECIP)
        p1 = p0 + jnp.dot(attn.astype(BF16), wo1[...],
                          preferred_element_type=F32)
        h = jnp.maximum(jnp.dot(_ln_rows(p1).astype(BF16), wm1[...],
                                preferred_element_type=F32), 0.0)
        po_ref[0] = p1 + jnp.dot(h.astype(BF16), wm2[...],
                                 preferred_element_type=F32)


def _feature_update_kernel(f_ref, k2_ref, v2_ref, wq2t, wo2t, wf1t, wf2t,
                           o_ref, *, scale):
    """Features attend to (updated) priors + feature MLP, transposed layout."""
    x = f_ref[0].astype(F32)                              # [C, ts]

    q2t = jnp.dot(wq2t[...], _ln_cols(x).astype(BF16),
                  preferred_element_type=F32)             # [C, ts]
    st = jnp.dot(k2_ref[0], q2t.astype(BF16),
                 preferred_element_type=F32) * scale      # [P, ts]
    st = st - jnp.max(st, axis=0, keepdims=True)
    e = jnp.exp(st)
    att_t = e * pl.reciprocal(jnp.sum(e, axis=0, keepdims=True),
                              approx=APPROX_RECIP)

    ao_t = jax.lax.dot_general(                           # (att @ v)^T  [C, ts]
        v2_ref[0], att_t.astype(BF16), (((0,), (0,)), ((), ())),
        preferred_element_type=F32)
    x = x + jnp.dot(wo2t[...], ao_t.astype(BF16), preferred_element_type=F32)

    h_t = jnp.maximum(jnp.dot(wf1t[...], _ln_cols(x).astype(BF16),
                              preferred_element_type=F32), 0.0)   # [4C, ts]
    x = x + jnp.dot(wf2t[...], h_t.astype(BF16), preferred_element_type=F32)
    o_ref[0] = x.astype(o_ref.dtype)


def fusion_block_pallas(f, p, wd, ts):
    """f: [B, C, S] bf16 (channels-first tokens), p: [B, P, C] f32."""
    f = f.astype(BF16)
    B, C, S = f.shape
    P = p.shape[1]
    n_s = S // ts
    scale = 1.0 / (C ** 0.5)

    wq1 = wd['wq1'].astype(BF16)
    wk1t = wd['wk1'].T.astype(BF16)
    wv1t = wd['wv1'].T.astype(BF16)
    wo1 = wd['wo1'].astype(BF16)
    wm1 = wd['wm1'].astype(BF16)
    wm2 = wd['wm2'].astype(BF16)
    wq2t = wd['wq2'].T.astype(BF16)
    wo2t = wd['wo2'].T.astype(BF16)
    wf1t = wd['wf1'].T.astype(BF16)
    wf2t = wd['wf2'].T.astype(BF16)

    def wspec(w):
        return pl.BlockSpec(w.shape, lambda b, s: (0, 0))

    f_tile = pl.BlockSpec((1, C, ts), lambda b, s: (b, 0, s))
    if n_s >= 3:   # deeper pipelining on the streamed feature tile
        f_tile_stream = pl.BlockSpec((1, C, ts), lambda b, s: (b, 0, s),
                                     pipeline_mode=pl.Buffered(3))
    else:
        f_tile_stream = f_tile
    p_full = pl.BlockSpec((1, P, C), lambda b, s: (b, 0, 0))

    p_new = pl.pallas_call(
        functools.partial(_prior_update_kernel, scale=scale),
        out_shape=jax.ShapeDtypeStruct((B, P, C), F32),
        grid=(B, n_s),
        in_specs=[f_tile_stream, p_full, wspec(wq1), wspec(wk1t), wspec(wv1t),
                  wspec(wo1), wspec(wm1), wspec(wm2)],
        out_specs=p_full,
        scratch_shapes=[pltpu.VMEM((P, C), BF16),    # hoisted q projection
                        pltpu.VMEM((P, 1), F32),     # m
                        pltpu.VMEM((P, 1), F32),     # l
                        pltpu.VMEM((P, C), F32)],    # acc
        compiler_params=pltpu.CompilerParams(
            dimension_semantics=("parallel", "arbitrary")),
    )(f, p, wq1, wk1t, wv1t, wo1, wm1, wm2)

    # Prior-side K/V for the feature update: tiny, computed once per batch.
    k2 = jnp.einsum('bpc,cd->bpd', p_new, wd['wk2']).astype(BF16)
    v2 = jnp.einsum('bpc,cd->bpd', p_new, wd['wv2']).astype(BF16)

    f_new = pl.pallas_call(
        functools.partial(_feature_update_kernel, scale=scale),
        out_shape=jax.ShapeDtypeStruct((B, C, S), BF16),
        grid=(B, n_s),
        in_specs=[f_tile, p_full, p_full, wspec(wq2t),
                  wspec(wo2t), wspec(wf1t), wspec(wf2t)],
        out_specs=f_tile,
        compiler_params=pltpu.CompilerParams(
            dimension_semantics=("parallel", "parallel")),
    )(f, k2, v2, wq2t, wo2t, wf1t, wf2t)
    return f_new, p_new


# ---------------------------------------------------------------------------
# Small dense / batched-matmul heads
# ---------------------------------------------------------------------------
def _dense_kernel(x_ref, w_ref, b_ref, o_ref, *, relu):
    y = jnp.dot(x_ref[...].astype(BF16), w_ref[...],
                preferred_element_type=F32) + b_ref[...]
    if relu:
        y = jnp.maximum(y, 0.0)
    o_ref[...] = y


def dense_pallas(x, w, b, relu=False):
    M, K = x.shape
    N = w.shape[1]
    Mp = max(8, ((M + 7) // 8) * 8)
    tm = min(256, Mp)
    Mp = ((Mp + tm - 1) // tm) * tm
    xp = jnp.pad(x, ((0, Mp - M), (0, 0))) if Mp != M else x
    out = pl.pallas_call(
        functools.partial(_dense_kernel, relu=relu),
        out_shape=jax.ShapeDtypeStruct((Mp, N), F32),
        grid=(Mp // tm,),
        in_specs=[pl.BlockSpec((tm, K), lambda i: (i, 0)),
                  pl.BlockSpec((K, N), lambda i: (0, 0)),
                  pl.BlockSpec((1, N), lambda i: (0, 0))],
        out_specs=pl.BlockSpec((tm, N), lambda i: (i, 0)),
        compiler_params=pltpu.CompilerParams(
            dimension_semantics=("parallel",)),
    )(xp, w.astype(BF16), b.reshape(1, N))
    return out[:M]


def _bmm_kernel(a_ref, x_ref, o_ref):
    o_ref[0] = jnp.dot(a_ref[0].astype(BF16), x_ref[0].astype(BF16),
                       preferred_element_type=F32)


def bmm_pallas(a, x, ts):
    """a: [B, n, C], x: [B, C, S] -> [B, n, S] (S-tiled, lane-dense output)."""
    B, n, C = a.shape
    S = x.shape[2]
    n_s = S // ts
    return pl.pallas_call(
        _bmm_kernel,
        out_shape=jax.ShapeDtypeStruct((B, n, S), F32),
        grid=(B, n_s),
        in_specs=[pl.BlockSpec((1, n, C), lambda b, s: (b, 0, 0)),
                  pl.BlockSpec((1, C, ts), lambda b, s: (b, 0, s))],
        out_specs=pl.BlockSpec((1, n, ts), lambda b, s: (b, 0, s)),
        compiler_params=pltpu.CompilerParams(
            dimension_semantics=("parallel", "parallel")),
    )(a, x)


# ---------------------------------------------------------------------------
# Glue: 3D conv (XLA), pooling, upsampling, UNet blocks
# ---------------------------------------------------------------------------
def conv3d(x, w):
    """3x3x3 / 1x1x1 conv, bias=False, 'same' pad, bf16 in / f32 acc / bf16 out."""
    kd, kh, kw = w.shape[2], w.shape[3], w.shape[4]
    pad = [(kd // 2, kd // 2), (kh // 2, kh // 2), (kw // 2, kw // 2)]
    y = jax.lax.conv_general_dilated(
        x.astype(BF16), w.astype(BF16),
        window_strides=(1, 1, 1), padding=pad,
        dimension_numbers=('NCDHW', 'OIDHW', 'NCDHW'),
        preferred_element_type=F32)
    return y.astype(BF16)


def basic_block(x5, p):
    """conv-IN-ReLU -> conv-IN -> (+ shortcut(1x1 conv-IN) or identity) -> ReLU."""
    B, Cin, D, H, W = x5.shape
    S = D * H * W

    h1 = conv3d(x5, p['conv1'])                          # bf16
    Co = h1.shape[1]
    ts = mem_tile(S, Co)
    h1f = h1.reshape(B, Co, S)
    sc1, bi1 = in_norm_coeffs(in_stats_pallas(h1f, ts), S)
    h1n = in_apply_pallas(h1f, sc1, bi1, ts, relu=True)

    h2f = conv3d(h1n.reshape(B, Co, D, H, W), p['conv2']).reshape(B, Co, S)
    sc2, bi2 = in_norm_coeffs(in_stats_pallas(h2f, ts), S)

    if 'shortcut' in p:
        w2 = p['shortcut'].reshape(Co, Cin).astype(BF16)
        res, rstats = conv1x1_stats_pallas(
            x5.reshape(B, Cin, S).astype(BF16), w2, ts)
        rsc, rbi = in_norm_coeffs(rstats, S)
        outf = in_apply_pallas(h2f, sc2, bi2, ts, relu=True,
                               residual=res, r_scale=rsc, r_bias=rbi)
    else:
        outf = in_apply_pallas(h2f, sc2, bi2, ts, relu=True,
                               residual=x5.reshape(B, Cin, S).astype(BF16))
    return outf.reshape(B, Co, D, H, W)


def inconv(x, p):
    x = conv3d(x, p['conv1'])          # plain conv (no norm / relu)
    return basic_block(x, p['block'])


def maxpool3d(x, s=2):
    B, C, D, H, W = x.shape
    return x.reshape(B, C, D // s, s, H // s, s, W // s, s).max(axis=(3, 5, 7))


def down_block(x, p):
    x = maxpool3d(x, 2)
    for blk in p['blocks']:
        x = basic_block(x, blk)
    return x


def trilinear_upsample(x, out_dhw):
    # F.interpolate(mode='trilinear', align_corners=True); keeps x's dtype (bf16).
    def interp(x, axis, out_size):
        in_size = x.shape[axis]
        if out_size == in_size:
            return x
        if in_size == 1 or out_size == 1:
            pos = jnp.zeros((out_size,), F32)
        else:
            pos = jnp.arange(out_size, dtype=F32) * ((in_size - 1) / (out_size - 1))
        i0 = jnp.floor(pos).astype(jnp.int32)
        i1 = jnp.minimum(i0 + 1, in_size - 1)
        w = pos - i0.astype(F32)
        x0 = jnp.take(x, i0, axis=axis).astype(F32)
        x1 = jnp.take(x, i1, axis=axis).astype(F32)
        wshape = [1] * x.ndim
        wshape[axis] = out_size
        w = w.reshape(wshape)
        return (x0 * (1.0 - w) + x1 * w).astype(x.dtype)

    x = interp(x, 2, out_dhw[0])
    x = interp(x, 3, out_dhw[1])
    x = interp(x, 4, out_dhw[2])
    return x


def up_block(x1, x2, p):
    # TODO(synk): split the first conv's weights over (x2, upsampled x1) to avoid
    # materializing the channel concat; concat is done in bf16 to halve traffic.
    x1 = trilinear_upsample(x1, x2.shape[2:])
    x = jnp.concatenate([x2.astype(BF16), x1.astype(BF16)], axis=1)
    for blk in p['blocks']:
        x = basic_block(x, blk)
    return x


def prior_fusion_layer(x, tgt_idx, mod_idx, p):
    # TODO(synk): exact PriorInitFusionLayer source not provided; Hermes-style
    # prior-token gather + block_num bidirectional cross-attention blocks.
    B, C, D, H, W = x.shape
    S = D * H * W
    f = x.reshape(B, C, S)
    task = p['task_prior'][tgt_idx]        # [B, tn_sel, C]
    mod = p['mod_prior'][mod_idx]          # [B, mn_sel, C]
    priors = jnp.concatenate([task, mod], axis=1)
    ts = fuse_tile(S, C)
    for blk in p['blocks']:
        f, priors = fusion_block_pallas(f, priors, blk, ts)
    return f.reshape(B, C, D, H, W), priors


def hierarchy_prior_classifier(feat, task_prior_list, p):
    # TODO(synk): reference HierarchyPriorClassifier internals unavailable;
    # MLP over concatenated multi-scale task priors -> dynamic 1x1x1 kernel.
    pri = jnp.concatenate(task_prior_list, axis=-1)        # [B, tn, 34*base_ch]
    B, n, cin = pri.shape
    h = dense_pallas(pri.reshape(B * n, cin), p['w1'], p['b1'], relu=True)
    kern = dense_pallas(h, p['w2'], p['b2'], relu=False)
    kern = kern.reshape(B, n, -1)
    Bf, C, D, H, W = feat.shape
    S = D * H * W
    out = bmm_pallas(kern, feat.reshape(Bf, C, S), mem_tile(S, C))
    return out.reshape(B, n, D, H, W)


def modality_classifier(mod_prior_list, p):
    # TODO(synk): reference ModalityClassifier internals unavailable; MLP head.
    pri = jnp.concatenate(mod_prior_list, axis=-1)         # [B, mn_sel, 34*base_ch]
    B, n, cin = pri.shape
    h = dense_pallas(pri.reshape(B * n, cin), p['w1'], p['b1'], relu=True)
    out = dense_pallas(h, p['w2'], p['b2'], relu=False)
    return out.reshape(B, n, -1)


# ---------------------------------------------------------------------------
# Hermes_UNet forward (mirrors the PyTorch forward exactly)
# ---------------------------------------------------------------------------
def hermes_unet_forward(params, x, tgt_idx, mod_idx):
    tn = tgt_idx.shape[1]
    x1 = inconv(x, params['inc'])
    x2 = down_block(x1, params['down1'])
    x3 = down_block(x2, params['down2'])
    x3, priors_2 = prior_fusion_layer(x3, tgt_idx, mod_idx, params['fuse2'])
    x4 = down_block(x3, params['down3'])
    x4, priors_3 = prior_fusion_layer(x4, tgt_idx, mod_idx, params['fuse3'])
    x5 = down_block(x4, params['down4'])
    x5, priors_4 = prior_fusion_layer(x5, tgt_idx, mod_idx, params['fuse4'])
    out = up_block(x5, x4, params['up1'])
    out, priors_5 = prior_fusion_layer(out, tgt_idx, mod_idx, params['fuse5'])
    out = up_block(out, x3, params['up2'])
    out, priors_6 = prior_fusion_layer(out, tgt_idx, mod_idx, params['fuse6'])
    out = up_block(out, x2, params['up3'])
    out = up_block(out, x1, params['up4'])

    plist = (priors_2, priors_3, priors_4, priors_5, priors_6)
    task_prior_list = [pr[:, :tn, :] for pr in plist]
    mod_prior_list = [pr[:, tn:, :] for pr in plist]
    seg = hierarchy_prior_classifier(out, task_prior_list, params['out'])
    mod_out = modality_classifier(mod_prior_list, params['mod_out'])
    return seg, mod_out


# ---------------------------------------------------------------------------
# Deterministic parameter init (synthetic weights, not a checkpoint)
# ---------------------------------------------------------------------------
class KeyGen:
    def __init__(self, seed):
        self._key = jax.random.PRNGKey(seed)

    def __call__(self):
        self._key, sub = jax.random.split(self._key)
        return sub


def conv_w(kg, cout, cin, k):
    fan = cin * k * k * k
    return jax.random.normal(kg(), (cout, cin, k, k, k), F32) * (2.0 / fan) ** 0.5


def lin_w(kg, cin, cout):
    return jax.random.normal(kg(), (cin, cout), F32) * (1.0 / cin) ** 0.5


def init_basic_block(kg, cin, cout, k=3):
    p = {'conv1': conv_w(kg, cout, cin, k),
         'conv2': conv_w(kg, cout, cout, k)}
    if cin != cout:
        p['shortcut'] = conv_w(kg, cout, cin, 1)
    return p


def init_stage(kg, first_in, cout, num_block):
    blocks = [init_basic_block(kg, first_in, cout)]
    for _ in range(num_block - 1):
        blocks.append(init_basic_block(kg, cout, cout))
    return {'blocks': blocks}


def init_fusion(kg, dim, block_num, tn_pool, mn_pool):
    blocks = []
    for _ in range(block_num):
        blocks.append({
            'wq1': lin_w(kg, dim, dim), 'wk1': lin_w(kg, dim, dim),
            'wv1': lin_w(kg, dim, dim), 'wo1': lin_w(kg, dim, dim),
            'wm1': lin_w(kg, dim, 4 * dim), 'wm2': lin_w(kg, 4 * dim, dim),
            'wq2': lin_w(kg, dim, dim), 'wk2': lin_w(kg, dim, dim),
            'wv2': lin_w(kg, dim, dim), 'wo2': lin_w(kg, dim, dim),
            'wf1': lin_w(kg, dim, 4 * dim), 'wf2': lin_w(kg, 4 * dim, dim)})
    return {'task_prior': jax.random.normal(kg(), (tn_pool, dim), F32) * 0.02,
            'mod_prior': jax.random.normal(kg(), (mn_pool, dim), F32) * 0.02,
            'blocks': blocks}


def init_params(in_ch, base_ch, tn_pool, mn_pool, num_block=(2, 2, 2, 2)):
    kg = KeyGen(0)
    C = base_ch
    params = {}
    params['inc'] = {'conv1': conv_w(kg, C, in_ch, 3),
                     'block': init_basic_block(kg, C, C)}
    params['down1'] = init_stage(kg, C, 2 * C, num_block[0])
    params['down2'] = init_stage(kg, 2 * C, 4 * C, num_block[1])
    params['fuse2'] = init_fusion(kg, 4 * C, 2, tn_pool, mn_pool)
    params['down3'] = init_stage(kg, 4 * C, 8 * C, num_block[2])
    params['fuse3'] = init_fusion(kg, 8 * C, 2, tn_pool, mn_pool)
    params['down4'] = init_stage(kg, 8 * C, 10 * C, num_block[3])
    params['fuse4'] = init_fusion(kg, 10 * C, 4, tn_pool, mn_pool)
    params['up1'] = init_stage(kg, 10 * C + 8 * C, 8 * C, num_block[2])
    params['fuse5'] = init_fusion(kg, 8 * C, 2, tn_pool, mn_pool)
    params['up2'] = init_stage(kg, 8 * C + 4 * C, 4 * C, num_block[1])
    params['fuse6'] = init_fusion(kg, 4 * C, 2, tn_pool, mn_pool)
    params['up3'] = init_stage(kg, 4 * C + 2 * C, 2 * C, num_block[0])
    params['up4'] = init_stage(kg, 2 * C + C, C, 2)
    params['out'] = {'w1': lin_w(kg, 34 * C, C), 'b1': jnp.zeros((C,), F32),
                     'w2': lin_w(kg, C, C), 'b2': jnp.zeros((C,), F32)}
    hid = (34 * C) // 2
    params['mod_out'] = {'w1': lin_w(kg, 34 * C, hid),
                         'b1': jnp.zeros((hid,), F32),
                         'w2': lin_w(kg, hid, mn_pool),
                         'b2': jnp.zeros((mn_pool,), F32)}
    return params


# ---------------------------------------------------------------------------
# Small numeric self-check of the tiled / chunked InstanceNorm path
# ---------------------------------------------------------------------------
def _selfcheck_instancenorm():
    key = jax.random.PRNGKey(1)
    B, C, S = 2, 8, 512
    x = (jax.random.normal(key, (B, C, S), F32) * 2.0 + 0.5).astype(BF16)
    # reference (same bf16 input, f32 math)
    xf = x.astype(F32)
    mean = xf.mean(axis=2, keepdims=True)
    var = xf.var(axis=2, keepdims=True)
    ref = (xf - mean) * jax.lax.rsqrt(var + EPS)
    # kernel path: 4 S-tiles -> 2 chunks x 2 tiles (exercises accumulation)
    ts = 128
    sc, bi = in_norm_coeffs(in_stats_pallas(x, ts), S)
    y = in_apply_pallas(x, sc, bi, ts, relu=False, alias=False)
    err = float(jnp.max(jnp.abs(y.astype(F32) - ref)))
    assert err < 5e-2, err


# ---------------------------------------------------------------------------
if __name__ == "__main__":
    _selfcheck_instancenorm()

    B, in_ch, base_ch = 2, 1, 4
    D = H = W = 16
    tn_pool, mn_pool = 8, 4      # prior pool sizes (module defaults tn=72, mn=6, shrunk)
    tn_sel, mn_sel = 3, 1        # task / modality priors selected per sample

    key = jax.random.PRNGKey(0)
    kx, kt, km = jax.random.split(key, 3)
    x = jax.random.normal(kx, (B, in_ch, D, H, W), F32)
    tgt_idx = jax.random.randint(kt, (B, tn_sel), 0, tn_pool)
    mod_idx = jax.random.randint(km, (B, mn_sel), 0, mn_pool)

    params = init_params(in_ch, base_ch, tn_pool, mn_pool)

    fwd = jax.jit(hermes_unet_forward)
    seg, mod_out = fwd(params, x, tgt_idx, mod_idx)
    jax.block_until_ready((seg, mod_out))

    assert seg.shape == (B, tn_sel, D, H, W), seg.shape
    assert mod_out.shape == (B, mn_sel, mn_pool), mod_out.shape
    assert bool(jnp.all(jnp.isfinite(seg))) and bool(jnp.all(jnp.isfinite(mod_out)))
    print("KERNEL_OK")
</pallas_src>

<mosaic_0001>
module attributes {stable_mosaic.version = 11 : i64} {
  func.func @_in_stats_kernel(%arg0: i32, %arg1: i32, %arg2: i32, %arg3: memref<1x8x128xbf16, #tpu.memory_space<vmem>>, %arg4: memref<1x1x8x2xf32, #tpu.memory_space<vmem>>) attributes {dimension_semantics = [#tpu.dimension_semantics<parallel>, #tpu.dimension_semantics<parallel>, #tpu.dimension_semantics<arbitrary>], iteration_bounds = array<i64: 2, 2, 2>, scalar_prefetch = 0 : i64, scratch_operands = 0 : i64, tpu.core_type = #tpu.core_type<tc>, window_params = [{transform_indices = @transform_0, window_bounds = array<i64: 1, 8, 128>}, {transform_indices = @transform_1, window_bounds = array<i64: 1, 1, 8, 2>}]} {
    %c0_i32 = arith.constant 0 : i32
    %0 = arith.cmpi eq, %arg2, %c0_i32 : i32
    %1 = arith.extui %0 : i1 to i32
    %c0_i32_0 = arith.constant 0 : i32
    %2 = arith.cmpi ne, %1, %c0_i32_0 : i32
    scf.if %2 {
      %cst_12 = arith.constant 0.000000e+00 : f32
      %18 = vector.broadcast %cst_12 : f32 to vector<1x1x8x2xf32>
      %c0_13 = arith.constant 0 : index
      %c0_14 = arith.constant 0 : index
      %c0_15 = arith.constant 0 : index
      %c0_16 = arith.constant 0 : index
      %19 = vector.load %arg4[%c0_13, %c0_14, %c0_15, %c0_16] : memref<1x1x8x2xf32, #tpu.memory_space<vmem>>, vector<1x1x8x2xf32>
      tpu.vector_store %arg4[%c0_13, %c0_14, %c0_15, %c0_16], %18 {strides = array<i32>} : memref<1x1x8x2xf32, #tpu.memory_space<vmem>>, vector<1x1x8x2xf32>,
    } else {
    }
    %c0 = arith.constant 0 : index
    %c0_1 = arith.constant 0 : index
    %c0_2 = arith.constant 0 : index
    %3 = vector.load %arg3[%c0, %c0_1, %c0_2] : memref<1x8x128xbf16, #tpu.memory_space<vmem>>, vector<1x8x128xbf16>
    %4 = vector.shape_cast %3 : vector<1x8x128xbf16> to vector<8x128xbf16>
    %5 = arith.extf %4 : vector<8x128xbf16> to vector<8x128xf32>
    %cst = arith.constant dense<0.000000e+00> : vector<8xf32>
    %6 = vector.multi_reduction <add>, %5, %cst [1] : vector<8x128xf32> to vector<8xf32>
    %7 = vector.shape_cast %6 : vector<8xf32> to vector<8x1xf32>
    %8 = arith.mulf %5, %5 : vector<8x128xf32>
    %cst_3 = arith.constant dense<0.000000e+00> : vector<8xf32>
    %9 = vector.multi_reduction <add>, %8, %cst_3 [1] : vector<8x128xf32> to vector<8xf32>
    %10 = vector.shape_cast %9 : vector<8xf32> to vector<8x1xf32>
    %c0_4 = arith.constant 0 : index
    %c0_5 = arith.constant 0 : index
    %c0_6 = arith.constant 0 : index
    %c0_7 = arith.constant 0 : index
    %11 = vector.load %arg4[%c0_4, %c0_5, %c0_6, %c0_7] : memref<1x1x8x2xf32, #tpu.memory_space<vmem>>, vector<1x1x8x2xf32>
    %12 = vector.shape_cast %11 : vector<1x1x8x2xf32> to vector<8x2xf32>
    %13 = tpu.concatenate %7, %10 in 1 : vector<8x1xf32>, vector<8x1xf32> -> vector<8x2xf32>
    %14 = arith.addf %12, %13 : vector<8x2xf32>
    %c0_8 = arith.constant 0 : index
    %c0_9 = arith.constant 0 : index
    %c0_10 = arith.constant 0 : index
    %c0_11 = arith.constant 0 : index
    %15 = vector.load %arg4[%c0_8, %c0_9, %c0_10, %c0_11] : memref<1x1x8x2xf32, #tpu.memory_space<vmem>>, vector<1x1x8x2xf32>
    %16 = vector.shape_cast %15 : vector<1x1x8x2xf32> to vector<8x2xf32>
    %17 = vector.shape_cast %14 : vector<8x2xf32> to vector<1x1x8x2xf32>
    tpu.vector_store %arg4[%c0_8, %c0_9, %c0_10, %c0_11], %17 {strides = array<i32>} : memref<1x1x8x2xf32, #tpu.memory_space<vmem>>, vector<1x1x8x2xf32>,
    return
  }
  func.func @transform_0(%arg0: i32, %arg1: i32, %arg2: i32) -> (i32, i32, i32) {
    %c2_i32 = arith.constant 2 : i32
    %0 = arith.muli %arg1, %c2_i32 : i32
    %1 = arith.addi %0, %arg2 : i32
    %c0_i32 = arith.constant 0 : i32
    %c0_i32_0 = arith.constant 0 : i32
    return %arg0, %c0_i32, %1 : i32, i32, i32
  }
  func.func @transform_1(%arg0: i32, %arg1: i32, %arg2: i32) -> (i32, i32, i32, i32) {
    %c0_i32 = arith.constant 0 : i32
    %c0_i32_0 = arith.constant 0 : i32
    %c0_i32_1 = arith.constant 0 : i32
    return %arg0, %arg1, %c0_i32, %c0_i32_0 : i32, i32, i32, i32
  }
}

</mosaic_0001>

<bundles_post_ra>
// kernel: tpu_custom_call.1
= control target key start
LH: loop header
LB: loop body
LE: loop exit
PB: predicated region body
PF: predicated region fallthrough
CT: control target
= control target key end

     0   :  { %6 = vsyncpa [#allocation3], 0  ;;  %s702_s0 = inlined_call_operand.hbm [shape: bf16[2,8,512], index: 0, kind: input, shape index: {}]   ;;  %s703_s1 = inlined_call_operand.vmem [shape: f32[2,2,8,2], index: 1, kind: output, shape index: {}]  }
   0x1   :  { %8 = vsyncpa [#allocation3 + $0x1], 0  ;;  %s525_s6 = smov 0   ;;  %s527_s7 = smov 0  }
   0x2   :  { %s529_s8 = smov 0   ;;  %s531_s9 = smov 0  }
   0x3   :  { %s533_s10 = smov 0   ;;  %s535_s11 = smov 0  }
   0x4   :  { %s537_s12 = smov 0   ;;  %s539_s13 = smov 0  }
   0x5   :  { %s541_s14 = smov 0   ;;  %s543_s15 = smov 0  }
   0x6 LB: > { %s294_s16 = sadd.s32 4294967295, %s511_s15   ;;  %s26_s17 = sadd.s32 1, %s499_s12  ;;  %s511_s15 = sphi %s543_s15, %s14_s15   ;;  %s507_s14 = sphi %s541_s14, %s720_s14   ;;  %s503_s13 = sphi %s539_s13, %s719_s13   ;;  %s499_s12 = sphi %s537_s12, %s718_s12   ;;  %s495_s11 = sphi %s535_s11, %s717_s11   ;;  %s491_s10 = sphi %s533_s10, %s716_s10   ;;  %s487_s9 = sphi %s531_s9, %s715_s9   ;;  %s483_s8 = sphi %s529_s8, %s714_s8   ;;  %s479_s7 = sphi %s527_s7, %s713_s7   ;;  %s475_s6 = sphi %s525_s6, %s712_s6  }
   0x7   : > { %p27_p0 = scmp.ge.s32.totalorder %s26_s17, 2  ;;  %s29_s18 = sadd.s32 1, %s503_s13 }
   0x8   : > { %s33_s19 = sadd.s32 1, %s507_s14  ;;  %s296_s20 = sshll.u32 %s503_s13, 1 }
   0x9   : > { %s722_s17 = smov (%p27_p0, %s26_s17), 0  ;;  %s724_s18 = smov (!%p27_p0, %s29_s18), %s503_s13 }
   0xa   : > { %s38_s21 = sadd.s32 %s499_s12, %s296_s20  ;;  %s46_s22 = sadd.s32 1, %s483_s8 }
   0xb   : > { %p31_p1 = scmp.ge.s32.totalorder %s724_s18, 2  ;;  %p53_p2 = scmp.ne.s32.totalorder %s483_s8, %s479_s7 }
   0xc   : > { %p54_p3 = scmp.eq.s32.totalorder %s511_s15, 0  ;;  %p59_p4 = scmp.ne.s32.totalorder %s479_s7, %s475_s6 }
   0xd   : > { %s726_s18 = smov (%p31_p1, %s724_s18), 0  ;;  %s728_s19 = smov (!%p31_p1, %s33_s19), %s507_s14 }
   0xe   : > { %705 = sst [smem:[#allocation5_spill]] %s726_s18  ;;  %s297_s23 = sshll.u32 %s726_s18, 1 }
   0xf   : > { %p594_p5 = por %p54_p3, %p53_p2  ;;  %p35_p6 = scmp.ge.s32.totalorder %s728_s19, 2 }
  0x10   : > { %s40_s25 = sadd.s32 %s297_s23, %s722_s17  ;;  %p60_p7 = scmp.eq.s32.totalorder %s294_s16, 0 }
  0x11   : > { %s42_s26 = ssub.s32 %s38_s21, %s40_s25  ;;  %s730_s19 = smov (%p35_p6, %s728_s19), 0 }
  0x12   : > { %p601_p8 = por %p60_p7, %p59_p4  ;;  %s41_s28 = ssub.s32 %s507_s14, %s730_s19 }
  0x13   : > { %p317_p9 = scmp.lt.s32.totalorder %s511_s15, 8  ;;  %s43_s29 = sor.u32 %s42_s26, %s41_s28 }
  0x14   : > { %s111_s30 = sand.u32 1, %s483_s8   ;;  %p44_p10 = scmp.eq.s32.totalorder %s43_s29, 0 }
  0x15   : > { %s300_s2 = sshll.u32 %s111_s30, 2  ;;  %s302_s3 = sshll.u32 %s507_s14, 2 }
  0x16   : > { %s611_s4 = scalar_select %p44_p10, %s483_s8, %s46_s22  }
  0x17   : > { %s122_s5 = sadd.s32 %s302_s3, %s38_s21  ;;  %s115_s16 = scalar_lea.vmem [#allocation2], %s300_s2 }
  0x18   : > { %s303_s6 = sshll.u32 %s122_s5, 6  ;;  %s126_s20 = sshll.u32 %s115_s16, 4  ;;  %s618_s20 = int_to_ptr.vmem [resolvable:$true] %s126_s20 }
  0x19   : > { %s616_s18 = scalar_lea.hbm %s702_s0, %s303_s6  ;;  %p624_p11 = pnand %p317_p9, %p594_p5 }
  0x1a   : > { %s112_s21 = scalar_lea.sflag [#allocation3], %s111_s30  ;;  %s399_s26 = scalar_lea.hbm %s616_s18, 64 }
  0x1b   : > { %p400_p0 = scmp.ne.s32.totalorder %s616_s18, %s399_s26  ;;  %p401_p1 = pneg %p624_p11 }
  0x1c   : > { %s404_s29 = scalar_lea.hbm %s702_s0, 512  ;;  %p405_p4 = scmp.lt.u32.totalorder %s616_s18, %s702_s0 }
  0x1d   : > { %p402_p2 = pnand %p401_p1, %p400_p0  ;;  %p406_p5 = scmp.lt.u32.totalorder %s404_s29, %s399_s26 }
  0x1e   : > { %p408_p7 = scmp.lt.u32.totalorder %s399_s26, %s616_s18 }
  0x1f   : > { %p403_p3 = pneg %p402_p2  ;;  %p407_p6 = por %p406_p5, %p405_p4 }
  0x21   : > { %p409_p9 = por %p408_p7, %p407_p6 }
  0x23   : > { %p410_p10 = pnand %p409_p9, %p403_p3 }
  0x25   : > { %413 = shalt.err (!%p410_p10)
}
  0x26   : > { %s414_s30 = scalar_lea.vmem %s618_s20, 64  ;;  %s513_s5 = smov [#allocation2]  }
  0x27   : > { %p415_p0 = scmp.ne.s32.totalorder %s618_s20, %s414_s30  ;;  %s419_s6 = sshll.u32 %s513_s5, 4  ;;  %s420_s6 = int_to_ptr.vmem [resolvable:$false] %s419_s6 }
  0x28   : > { %s421_s16 = scalar_lea.vmem %s420_s6, 128  ;;  %p422_p13 = scmp.lt.s32.totalorder %s618_s20, %s420_s6 }
  0x29   : > { %p417_p2 = pnand %p415_p0, %p401_p1  ;;  %p423_p4 = scmp.lt.s32.totalorder %s421_s16, %s414_s30 }
  0x2b   : > { %p418_p12 = pneg %p417_p2  ;;  %p424_p5 = por %p423_p4, %p422_p13 }
  0x2d   : > { %p425_p6 = pnand %p424_p5, %p418_p12 }
  0x2f   : > { %428 = shalt.err (!%p425_p6)
}
  0x30   : > { %316 = dma.hbm_to_vmem [thread:$0]  (!%p624_p11), %s616_s18, 64, %s618_s20, %s112_s21  }
  0x31   : > { %p709_p3 = scmp.lt.s32.totalorder %s511_s15, 9  ;;  %p710_p7 = scmp.ge.s32.totalorder %s511_s15, 1 }
  0x33   : > { %p132_p1 = pnand %p710_p7, %p709_p3 }
  0x34   : > { %s137_s23 = sand.u32 (!%p132_p1), 1, %s479_s7  }
  0x35   : > { %135 = sbr.rel (%p132_p1) target bundleno = 224 (0xe0), region = 24  ;;  %s305_s25 = sshll.u32 (!%p132_p1), %s137_s23, 2 }
  0x36   : > { %s138_s26 = scalar_lea.sflag (!%p132_p1), [#allocation3], %s137_s23  ;;  %s141_s28 = scalar_lea.vmem (!%p132_p1), [#allocation2], %s305_s25 }
  0x3c   : > { %470 = dma.done.wait (%p601_p8), %s138_s26, 64  }
  0x3d   : > { %472 = vsyncadd (%p601_p8), %s138_s26, 4294967232  ;;  %p165_p11 = scmp.lt.s32.totalorder %s495_s11, 1  ;;  %p167_p12 = scmp.lt.s32.totalorder %s491_s10, 1 }
  0x3e   : > { %p308_p13 = scmp.ne.s32.totalorder %s487_s9, 0 }
  0x3f   : > { %s732_s11 = smov (!%p165_p11, %s495_s11), 1  ;;  %s734_s10 = smov (!%p167_p12, %s491_s10), 1 }
  0x40   : > { %s306_s18 = sshll.u32 %s732_s11, 1  ;;  %176 = sbr.rel (%p308_p13) target bundleno = 71 (0x47), region = 32  ;;  %vm177_vm0 = vcmask (!%p308_p13), 15360   ;;  %v514_v0 = vmov (!%p308_p13), 0.0  }
  0x41   : > { %s170_s20 = sadd.s32 %s306_s18, %s734_s10 }
  0x42   : > { %s307_s22 = sshll.u32 %s170_s20, 3 }
  0x43   : > { %s172_s29 = scalar_lea.vmem %s703_s1, %s307_s22 }
  0x44   : > { %178 = vst.msk [vmem:[%s172_s29] sm:$0xff] (!%p308_p13), %vm177_vm0, %v514_v0 }
  0x47 PF: > { %v179_v1 = vld [vmem:[%s141_s28] sm:$0xf]  ;;  %vm187_vm1 = vcmask 7168   ;;  %vm190_vm2 = vcmask 15360  }
  0x48   : > { %v180_v2 = vunpack.c.l.bf16 %v179_v1 }
  0x4a   : > { %181 = vadd.xlane.f32.xlu0 %v180_v2  ;;  %v183_v3 = vmul.f32 %v180_v2, %v180_v2 }
  0x4b   : > { %v186_v5 = vld [vmem:[%s172_s29] sm:$0xff] }
  0x4e   : > { %184 = vadd.xlane.f32.xlu0 %v183_v3 }
  0xd7   : > { %v182_v4 = vpop.xlane.xlu0 %181 }
  0xdb   : > { %v185_v6 = vpop.xlane.xlu0 %184 }
  0xdc   : > { %v188_v7 = vsel %vm187_vm1, %v182_v4, %v185_v6 }
  0xdd   : > { %v189_v8 = vadd.f32 %v188_v7, %v186_v5 }
  0xdf   : > { %191 = vst.msk [vmem:[%s172_s29] sm:$0xff] %vm190_vm2, %v189_v8 }
  0xe0 PF: > { %s14_s15 = sadd.s32 1, %s511_s15   ;;  %s711_s27 = sld [smem:[#allocation5_spill]] }
  0xe1   : > { %p11_p8 = scmp.ge.s32.totalorder %s14_s15, 10   ;;  %s712_s6 = smov %s479_s7 }
  0xe2   : > { %s713_s7 = smov %s483_s8  ;;  %s714_s8 = smov %s611_s4 }
  0xe3   : > { %s715_s9 = smov %s499_s12  ;;  %s716_s10 = smov %s503_s13 }
  0xe4   : > { %s717_s11 = smov %s507_s14  ;;  %s718_s12 = smov %s722_s17 }
  0xe5   : > { %s720_s14 = smov %s730_s19  ;;  %13 = sbr.rel (!%p11_p8) target bundleno = 6 (0x6), region = 68 }
  0xe6   : > { %s719_s13 = smov %s711_s27 }
  0xec   :  { %219 = vsyncpa [#allocation3], 1 }
  0xed   :  { %221 = vsyncpa [#allocation3 + $0x1], 1 }

</bundles_post_ra>
